<compile_context>
chip_gen: v7x
topology: tpu7x:2x2x1
jax: 0.10.0
libtpu: 0.0.40
codegen_flags: <defaults>
</compile_context>

<pallas_src>
import jax
import jax.numpy as jnp
from jax.experimental import pallas as pl
from jax.experimental.pallas import tpu as pltpu


def _round_up(x, m):
    return (x + m - 1) // m * m


def _qnet_kernel(x_ref, w_ref, b_ref, o_ref):
    """Fused two-head MLP: relu -> relu -> sigmoid, 3 matmuls total.

    x_ref: (tB, S)       batch tile (padded, lane-dense)
    w_ref: (3, S, S)     packed fused weights (layer 1/2/3)
    b_ref: (3, 1, S)     packed fused biases
    o_ref: (tB, S)       q1 in [:, :A], q2 in [:, A:2A], rest is padding
    """
    x = x_ref[...]

    h = jnp.dot(x, w_ref[0], preferred_element_type=jnp.float32) + b_ref[0]
    h = jnp.maximum(h, 0.0)                                       # F.relu
    h = jnp.dot(h, w_ref[1], preferred_element_type=jnp.float32) + b_ref[1]
    h = jnp.maximum(h, 0.0)                                       # F.relu
    o = jnp.dot(h, w_ref[2], preferred_element_type=jnp.float32) + b_ref[2]
    o_ref[...] = jax.nn.sigmoid(o)                                # F.sigmoid


def pack_params(params):
    """One-time packing of per-layer params into fused, lane-padded buffers.

    Weights are stored (in, out) i.e. transposed vs nn.Linear, so each layer
    is x @ W + b (identical to nn.Linear's x @ W.T + b).
    Returns (W_packed (3,S,S), b_packed (3,1,S), (D, H, A, S)).
    """
    D, H = params["w1"].shape
    A = params["w3"].shape[1]
    S = max(_round_up(D, 128), _round_up(2 * H, 128), _round_up(2 * A, 128))

    W = jnp.zeros((3, S, S), jnp.float32)
    b = jnp.zeros((3, 1, S), jnp.float32)

    # layer 1: [w1 | w4]  (shared input x)
    W = W.at[0, :D, :H].set(params["w1"])
    W = W.at[0, :D, H:2 * H].set(params["w4"])
    b = b.at[0, 0, :H].set(params["b1"].reshape(-1))
    b = b.at[0, 0, H:2 * H].set(params["b4"].reshape(-1))

    # layer 2: blockdiag(w2, w5)
    W = W.at[1, :H, :H].set(params["w2"])
    W = W.at[1, H:2 * H, H:2 * H].set(params["w5"])
    b = b.at[1, 0, :H].set(params["b2"].reshape(-1))
    b = b.at[1, 0, H:2 * H].set(params["b5"].reshape(-1))

    # layer 3: blockdiag(w3, w6)
    W = W.at[2, :H, :A].set(params["w3"])
    W = W.at[2, H:2 * H, A:2 * A].set(params["w6"])
    b = b.at[2, 0, :A].set(params["b3"].reshape(-1))
    b = b.at[2, 0, A:2 * A].set(params["b6"].reshape(-1))

    return W, b, (D, H, A, S)


def discrete_q_network_constraint(state, packed):
    """state: (B, num_inputs) f32.  packed: output of pack_params.

    Returns (q1, q2), each (B, num_actions) f32.
    """
    W, b, (D, H, A, S) = packed
    B = state.shape[0]

    # Batch tile: up to 512 rows (sublane-aligned), grid over batch.
    tB = min(512, _round_up(B, 8))
    Bp = _round_up(B, tB)

    # Lane-dense, zero-padded input slab (zero rows/cols are inert).
    x = jnp.zeros((Bp, S), jnp.float32).at[:B, :D].set(state.astype(jnp.float32))

    grid = (Bp // tB,)

    out = pl.pallas_call(
        _qnet_kernel,
        out_shape=jax.ShapeDtypeStruct((Bp, S), jnp.float32),
        grid=grid,
        in_specs=[
            pl.BlockSpec((tB, S), lambda i: (i, 0)),       # batch tile
            pl.BlockSpec((3, S, S), lambda i: (0, 0, 0)),  # weights (resident)
            pl.BlockSpec((3, 1, S), lambda i: (0, 0, 0)),  # biases  (resident)
        ],
        out_specs=pl.BlockSpec((tB, S), lambda i: (i, 0)),
        compiler_params=pltpu.CompilerParams(
            dimension_semantics=("parallel",)),
    )(x, W, b)

    # Padded columns hold sigmoid(0)=0.5 -> must be sliced off, never reduced.
    return out[:B, :A], out[:B, A:2 * A]


def init_params(key, num_inputs, num_actions, hidden_dim):
    """xavier_uniform weights (gain=1) and zero biases, matching weights_init_."""
    def xavier(k, fan_in, fan_out):
        limit = (6.0 / (fan_in + fan_out)) ** 0.5
        # stored as (in, out) — transpose of nn.Linear's (out, in)
        return jax.random.uniform(k, (fan_in, fan_out), jnp.float32,
                                  minval=-limit, maxval=limit)

    ks = jax.random.split(key, 6)
    return {
        "w1": xavier(ks[0], num_inputs, hidden_dim),
        "b1": jnp.zeros((1, hidden_dim), jnp.float32),
        "w2": xavier(ks[1], hidden_dim, hidden_dim),
        "b2": jnp.zeros((1, hidden_dim), jnp.float32),
        "w3": xavier(ks[2], hidden_dim, num_actions),
        "b3": jnp.zeros((1, num_actions), jnp.float32),
        "w4": xavier(ks[3], num_inputs, hidden_dim),
        "b4": jnp.zeros((1, hidden_dim), jnp.float32),
        "w5": xavier(ks[4], hidden_dim, hidden_dim),
        "b5": jnp.zeros((1, hidden_dim), jnp.float32),
        "w6": xavier(ks[5], hidden_dim, num_actions),
        "b6": jnp.zeros((1, num_actions), jnp.float32),
    }


def _reference(state, p):
    """Pure-JAX reference (unfused, unpadded) for correctness check."""
    def head(wA, bA, wB, bB, wC, bC):
        h = jax.nn.relu(state @ wA + bA)
        h = jax.nn.relu(h @ wB + bB)
        return jax.nn.sigmoid(h @ wC + bC)
    return (head(p["w1"], p["b1"], p["w2"], p["b2"], p["w3"], p["b3"]),
            head(p["w4"], p["b4"], p["w5"], p["b5"], p["w6"], p["b6"]))


if __name__ == "__main__":
    num_inputs, num_actions, hidden_dim = 16, 8, 32
    batch = 4

    key = jax.random.PRNGKey(0)
    k_state, k_params = jax.random.split(key)

    state = jax.random.normal(k_state, (batch, num_inputs), jnp.float32)
    params = init_params(k_params, num_inputs, num_actions, hidden_dim)
    packed = pack_params(params)   # one-time fuse + pad + pack

    q1, q2 = discrete_q_network_constraint(state, packed)
    jax.block_until_ready((q1, q2))

    r1, r2 = _reference(state, params)
    assert q1.shape == (batch, num_actions) and q2.shape == (batch, num_actions)
    assert jnp.allclose(q1, r1, atol=1e-5), "q1 mismatch vs reference"
    assert jnp.allclose(q2, r2, atol=1e-5), "q2 mismatch vs reference"

    print("KERNEL_OK")
</pallas_src>

<mosaic_0001>
module attributes {stable_mosaic.version = 11 : i64} {
  func.func @_qnet_kernel(%arg0: i32, %arg1: memref<8x128xf32, #tpu.memory_space<vmem>>, %arg2: memref<3x128x128xf32, #tpu.memory_space<vmem>>, %arg3: memref<3x1x128xf32, #tpu.memory_space<vmem>>, %arg4: memref<8x128xf32, #tpu.memory_space<vmem>>) attributes {dimension_semantics = [#tpu.dimension_semantics<parallel>], iteration_bounds = array<i64: 1>, scalar_prefetch = 0 : i64, scratch_operands = 0 : i64, tpu.core_type = #tpu.core_type<tc>, window_params = [{transform_indices = @transform_0, window_bounds = array<i64: 8, 128>}, {pipeline_mode = #tpu.pipeline_mode<synchronous>, transform_indices = @transform_1, window_bounds = array<i64: 3, 128, 128>}, {pipeline_mode = #tpu.pipeline_mode<synchronous>, transform_indices = @transform_2, window_bounds = array<i64: 3, 1, 128>}, {transform_indices = @transform_3, window_bounds = array<i64: 8, 128>}]} {
    %c0 = arith.constant 0 : index
    %c0_0 = arith.constant 0 : index
    %0 = vector.load %arg1[%c0, %c0_0] : memref<8x128xf32, #tpu.memory_space<vmem>>, vector<8x128xf32>
    %c0_1 = arith.constant 0 : index
    %c0_2 = arith.constant 0 : index
    %c0_3 = arith.constant 0 : index
    %1 = vector.load %arg2[%c0_1, %c0_2, %c0_3] : memref<3x128x128xf32, #tpu.memory_space<vmem>>, vector<1x128x128xf32>
    %2 = vector.shape_cast %1 : vector<1x128x128xf32> to vector<128x128xf32>
    %cst = arith.constant dense<0.000000e+00> : vector<8x128xf32>
    %3 = tpu.matmul %0, %2, %cst {dimension_numbers = #tpu.dot_dimension_numbers<[1], [0], [0], [1], [0, 0, 1, 1], [], []>} : vector<8x128xf32>, vector<128x128xf32>, vector<8x128xf32> -> vector<8x128xf32>
    %c0_4 = arith.constant 0 : index
    %c0_5 = arith.constant 0 : index
    %c0_6 = arith.constant 0 : index
    %4 = vector.load %arg3[%c0_4, %c0_5, %c0_6] : memref<3x1x128xf32, #tpu.memory_space<vmem>>, vector<1x1x128xf32>
    %5 = vector.shape_cast %4 : vector<1x1x128xf32> to vector<1x128xf32>
    %6 = vector.broadcast %5 : vector<1x128xf32> to vector<8x128xf32>
    %7 = arith.addf %3, %6 : vector<8x128xf32>
    %cst_7 = arith.constant 0.000000e+00 : f32
    %8 = vector.broadcast %cst_7 : f32 to vector<8x128xf32>
    %9 = arith.maximumf %7, %8 : vector<8x128xf32>
    %c1 = arith.constant 1 : index
    %c0_8 = arith.constant 0 : index
    %c0_9 = arith.constant 0 : index
    %10 = vector.load %arg2[%c1, %c0_8, %c0_9] : memref<3x128x128xf32, #tpu.memory_space<vmem>>, vector<1x128x128xf32>
    %11 = vector.shape_cast %10 : vector<1x128x128xf32> to vector<128x128xf32>
    %cst_10 = arith.constant dense<0.000000e+00> : vector<8x128xf32>
    %12 = tpu.matmul %9, %11, %cst_10 {dimension_numbers = #tpu.dot_dimension_numbers<[1], [0], [0], [1], [0, 0, 1, 1], [], []>} : vector<8x128xf32>, vector<128x128xf32>, vector<8x128xf32> -> vector<8x128xf32>
    %c1_11 = arith.constant 1 : index
    %c0_12 = arith.constant 0 : index
    %c0_13 = arith.constant 0 : index
    %13 = vector.load %arg3[%c1_11, %c0_12, %c0_13] : memref<3x1x128xf32, #tpu.memory_space<vmem>>, vector<1x1x128xf32>
    %14 = vector.shape_cast %13 : vector<1x1x128xf32> to vector<1x128xf32>
    %15 = vector.broadcast %14 : vector<1x128xf32> to vector<8x128xf32>
    %16 = arith.addf %12, %15 : vector<8x128xf32>
    %cst_14 = arith.constant 0.000000e+00 : f32
    %17 = vector.broadcast %cst_14 : f32 to vector<8x128xf32>
    %18 = arith.maximumf %16, %17 : vector<8x128xf32>
    %c2 = arith.constant 2 : index
    %c0_15 = arith.constant 0 : index
    %c0_16 = arith.constant 0 : index
    %19 = vector.load %arg2[%c2, %c0_15, %c0_16] : memref<3x128x128xf32, #tpu.memory_space<vmem>>, vector<1x128x128xf32>
    %20 = vector.shape_cast %19 : vector<1x128x128xf32> to vector<128x128xf32>
    %cst_17 = arith.constant dense<0.000000e+00> : vector<8x128xf32>
    %21 = tpu.matmul %18, %20, %cst_17 {dimension_numbers = #tpu.dot_dimension_numbers<[1], [0], [0], [1], [0, 0, 1, 1], [], []>} : vector<8x128xf32>, vector<128x128xf32>, vector<8x128xf32> -> vector<8x128xf32>
    %c2_18 = arith.constant 2 : index
    %c0_19 = arith.constant 0 : index
    %c0_20 = arith.constant 0 : index
    %22 = vector.load %arg3[%c2_18, %c0_19, %c0_20] : memref<3x1x128xf32, #tpu.memory_space<vmem>>, vector<1x1x128xf32>
    %23 = vector.shape_cast %22 : vector<1x1x128xf32> to vector<1x128xf32>
    %24 = vector.broadcast %23 : vector<1x128xf32> to vector<8x128xf32>
    %25 = arith.addf %21, %24 : vector<8x128xf32>
    %26 = arith.negf %25 : vector<8x128xf32>
    %27 = math.exp %26 : vector<8x128xf32>
    %cst_21 = arith.constant 1.000000e+00 : f32
    %28 = vector.broadcast %cst_21 : f32 to vector<8x128xf32>
    %29 = arith.addf %28, %27 : vector<8x128xf32>
    %30 = arith.divf %28, %29 : vector<8x128xf32>
    %c0_22 = arith.constant 0 : index
    %c0_23 = arith.constant 0 : index
    %31 = vector.load %arg4[%c0_22, %c0_23] : memref<8x128xf32, #tpu.memory_space<vmem>>, vector<8x128xf32>
    tpu.vector_store %arg4[%c0_22, %c0_23], %30 {strides = array<i32>} : memref<8x128xf32, #tpu.memory_space<vmem>>, vector<8x128xf32>,
    return
  }
  func.func @transform_0(%arg0: i32) -> (i32, i32) {
    %c0_i32 = arith.constant 0 : i32
    %c0_i32_0 = arith.constant 0 : i32
    return %arg0, %c0_i32 : i32, i32
  }
  func.func @transform_1(%arg0: i32) -> (i32, i32, i32) {
    %c0_i32 = arith.constant 0 : i32
    %c0_i32_0 = arith.constant 0 : i32
    %c0_i32_1 = arith.constant 0 : i32
    %c0_i32_2 = arith.constant 0 : i32
    return %c0_i32, %c0_i32_0, %c0_i32_1 : i32, i32, i32
  }
  func.func @transform_2(%arg0: i32) -> (i32, i32, i32) {
    %c0_i32 = arith.constant 0 : i32
    %c0_i32_0 = arith.constant 0 : i32
    %c0_i32_1 = arith.constant 0 : i32
    %c0_i32_2 = arith.constant 0 : i32
    return %c0_i32, %c0_i32_0, %c0_i32_1 : i32, i32, i32
  }
  func.func @transform_3(%arg0: i32) -> (i32, i32) {
    %c0_i32 = arith.constant 0 : i32
    %c0_i32_0 = arith.constant 0 : i32
    return %arg0, %c0_i32 : i32, i32
  }
}

</mosaic_0001>

<bundles_post_ra>
// kernel: tpu_custom_call.1
= control target key start
LH: loop header
LB: loop body
LE: loop exit
PB: predicated region body
PF: predicated region fallthrough
CT: control target
= control target key end

     0   :  { %8 = vsyncpa [#allocation3], 0  ;;  %s778_s0 = inlined_call_operand.hbm [shape: f32[8,128], index: 0, kind: input, shape index: {}]   ;;  %s779_s1 = inlined_call_operand.hbm [shape: f32[3,128,128], index: 1, kind: input, shape index: {}]   ;;  %s780_s2 = inlined_call_operand.vmem [shape: f32[3,1,128], index: 2, kind: input, shape index: {}]   ;;  %s781_s3 = inlined_call_operand.hbm [shape: f32[8,128], index: 3, kind: output, shape index: {}]  }
   0x1   :  { %9 = vsyncpa [#allocation6], 0 }
   0x2   :  { %10 = vsyncpa [#allocation4], 0  ;;  %s668_s12 = smov [#allocation2]   ;;  %s669_s14 = smov [#allocation5]  }
   0x3   :  { %s17_s13 = sshll.u32 %s668_s12, 4  ;;  %s26_s15 = sshll.u32 %s669_s14, 4  ;;  %s18_s13 = int_to_ptr.vmem [resolvable:$true] %s17_s13  ;;  %s696_s15 = int_to_ptr.vmem [resolvable:$true] %s26_s15 }
   0x4   :  { %s596_s18 = scalar_lea.hbm %s778_s0, 128 }
   0x5   :  { %p597_p0 = scmp.ne.s32.totalorder %s778_s0, %s596_s18  ;;  %p600_p1 = scmp.lt.u32.totalorder %s596_s18, %s778_s0 }
   0x7   :  { %p602_p2 = pnand %p600_p1, %p597_p0 }
   0x9   :  { %605 = shalt.err (!%p602_p2)
}
   0xa   :  { %s606_s23 = scalar_lea.vmem %s18_s13, 128  ;;  %p611_p4 = scmp.lt.s32.totalorder %s18_s13, %s18_s13 }
   0xb   :  { %p607_p3 = scmp.ne.s32.totalorder %s18_s13, %s606_s23  ;;  %p612_p5 = scmp.lt.s32.totalorder %s606_s23, %s606_s23 }
   0xd   :  { %p613_p6 = por %p612_p5, %p611_p4 }
   0xf   :  { %p614_p7 = pnand %p613_p6, %p607_p3 }
  0x11   :  { %617 = shalt.err (!%p614_p7)
}
  0x12   :  { %20 = dma.hbm_to_vmem [thread:$0]  %s778_s0, 128, %s18_s13, [#allocation3]  }
  0x13   :  { %s618_s28 = scalar_lea.hbm %s779_s1, 6144 }
  0x14   :  { %p619_p8 = scmp.ne.s32.totalorder %s779_s1, %s618_s28  ;;  %p622_p9 = scmp.lt.u32.totalorder %s618_s28, %s779_s1 }
  0x16   :  { %p624_p10 = pnand %p622_p9, %p619_p8 }
  0x18   :  { %627 = shalt.err (!%p624_p10)
}
  0x19   :  { %s628_s6 = scalar_lea.vmem %s696_s15, 6144  ;;  %p633_p12 = scmp.lt.s32.totalorder %s696_s15, %s696_s15 }
  0x1a   :  { %p629_p11 = scmp.ne.s32.totalorder %s696_s15, %s628_s6  ;;  %p634_p13 = scmp.lt.s32.totalorder %s628_s6, %s628_s6 }
  0x1c   :  { %p635_p0 = por %p634_p13, %p633_p12 }
  0x1e   :  { %p636_p1 = pnand %p635_p0, %p629_p11 }
  0x20   :  { %639 = shalt.err (!%p636_p1)
}
  0x21   :  { %s670_s0 = smov 128   ;;  %s671_s7 = smov 8  }
  0x22   :  { %32 = dma.hbm_to_vmem [thread:$0]  %s779_s1, 6144, %s696_s15, [#allocation6], %s670_s0, %s670_s0, %s671_s7  }
  0x23   :  { %662 = dma.done.wait [#allocation3], 128  }
  0x24   :  { %663 = vsyncadd [#allocation3], 4294967168 }
  0x25   :  { %664 = dma.done.wait [#allocation6], 6144  }
  0x26   :  { %665 = vsyncadd [#allocation6], 4294961152  ;;  %v672_v0 = vmov 0.0|0.0   ;;  %vm673_vm0 = vmmov 0   ;;  %v674_v1 = vmov 0.0   ;;  %v42_v2 = vld [vmem:[#allocation5] sm:$0xff] }
  0x27   :  { %512 = vmatprep.subr.bf16.mxu0 %v672_v0  ;;  %439 = vmatprep.mubr.msk.f32.mxu0 %vm673_vm0, %v674_v1  ;;  %v43_v3 = vld [vmem:[#allocation5 + $0x8] sm:$0xff]  ;;  %v44_v4 = vld [vmem:[#allocation5 + $0x10] sm:$0xff]  ;;  %v45_v6 = vld [vmem:[#allocation5 + $0x18] sm:$0xff]  ;;  %s675_s15 = smov [#allocation7]  }
  0x28   :  { %536 = vmatprep.subr.bf16.mxu1 %v672_v0  ;;  %474 = vmatprep.mubr.msk.f32.mxu1 %vm673_vm0, %v674_v1  ;;  %v513_v5 = vpack.c.bf16 %v43_v3, %v42_v2  ;;  %v516_v7 = vpack.c.bf16 %v45_v6, %v44_v4  ;;  %v46_v8 = vld [vmem:[#allocation5 + $0x20] sm:$0xff]  ;;  %v47_v9 = vld [vmem:[#allocation5 + $0x28] sm:$0xff]  ;;  %v139_v12 = vld [vmem:[#allocation5 + $0x90] sm:$0xff]  ;;  %s340_s16 = sshll.u32 %s675_s15, 4  ;;  %s341_s16 = int_to_ptr.vmem [resolvable:$true] %s340_s16 }
  0x29   :  { %v137_v10 = vld [vmem:[#allocation5 + $0x80] sm:$0xff]  ;;  %v138_v11 = vld [vmem:[#allocation5 + $0x88] sm:$0xff]  ;;  %v140_v13 = vld [vmem:[#allocation5 + $0x98] sm:$0xff]  ;;  %v519_v14 = vpack.c.bf16 %v47_v9, %v46_v8  ;;  %s640_s17 = scalar_lea.vmem %s341_s16, 128  ;;  %p645_p3 = scmp.lt.s32.totalorder %s341_s16, %s341_s16 }
  0x2a   :  { %514 = vmatpush3.bf16.msra.mxu0 %v513_v5  ;;  %v537_v15 = vpack.c.bf16 %v138_v11, %v137_v10  ;;  %v48_v16 = vld [vmem:[#allocation5 + $0x30] sm:$0xff]  ;;  %v49_v17 = vld [vmem:[#allocation5 + $0x38] sm:$0xff]  ;;  %v540_v18 = vpack.c.bf16 %v140_v13, %v139_v12  ;;  %v141_v19 = vld [vmem:[#allocation5 + $0xa0] sm:$0xff]  ;;  %p641_p2 = scmp.ne.s32.totalorder %s341_s16, %s640_s17  ;;  %p646_p4 = scmp.lt.s32.totalorder %s640_s17, %s640_s17 }
  0x2b   :  { %515 = vmatprep.subr.bf16.mxu0 %v672_v0  ;;  %v142_v20 = vld [vmem:[#allocation5 + $0xa8] sm:$0xff]  ;;  %v522_v21 = vpack.c.bf16 %v49_v17, %v48_v16  ;;  %v50_v22 = vld [vmem:[#allocation5 + $0x40] sm:$0xff]  ;;  %v143_v25 = vld [vmem:[#allocation5 + $0xb0] sm:$0xff] }
  0x2c   :  { %538 = vmatpush3.bf16.msra.mxu1 %v537_v15  ;;  %v51_v23 = vld [vmem:[#allocation5 + $0x48] sm:$0xff]  ;;  %v543_v24 = vpack.c.bf16 %v142_v20, %v141_v19  ;;  %v144_v26 = vld [vmem:[#allocation5 + $0xb8] sm:$0xff]  ;;  %v52_v28 = vld [vmem:[#allocation5 + $0x50] sm:$0xff]  ;;  %p647_p5 = por %p646_p4, %p645_p3 }
  0x2d   :  { %539 = vmatprep.subr.bf16.mxu1 %v672_v0  ;;  %v525_v27 = vpack.c.bf16 %v51_v23, %v50_v22  ;;  %v53_v29 = vld [vmem:[#allocation5 + $0x58] sm:$0xff]  ;;  %v546_v30 = vpack.c.bf16 %v144_v26, %v143_v25  ;;  %v145_v31 = vld [vmem:[#allocation5 + $0xc0] sm:$0xff]  ;;  %v146_v32 = vld [vmem:[#allocation5 + $0xc8] sm:$0xff] }
  0x2e   :  { %517 = vmatpush3.bf16.msra.mxu0 %v516_v7  ;;  %v528_v33 = vpack.c.bf16 %v53_v29, %v52_v28  ;;  %v54_v34 = vld [vmem:[#allocation5 + $0x60] sm:$0xff]  ;;  %v55_v35 = vld [vmem:[#allocation5 + $0x68] sm:$0xff]  ;;  %v549_v36 = vpack.c.bf16 %v146_v32, %v145_v31  ;;  %v147_v37 = vld [vmem:[#allocation5 + $0xd0] sm:$0xff]  ;;  %p648_p6 = pnand %p647_p5, %p641_p2 }
  0x2f   :  { %518 = vmatprep.subr.bf16.mxu0 %v672_v0  ;;  %v148_v38 = vld [vmem:[#allocation5 + $0xd8] sm:$0xff]  ;;  %v531_v39 = vpack.c.bf16 %v55_v35, %v54_v34  ;;  %v56_v40 = vld [vmem:[#allocation5 + $0x70] sm:$0xff]  ;;  %v149_v43 = vld [vmem:[#allocation5 + $0xe0] sm:$0xff] }
  0x30   :  { %541 = vmatpush3.bf16.msra.mxu1 %v540_v18  ;;  %v57_v41 = vld [vmem:[#allocation5 + $0x78] sm:$0xff]  ;;  %v552_v42 = vpack.c.bf16 %v148_v38, %v147_v37  ;;  %v150_v44 = vld [vmem:[#allocation5 + $0xe8] sm:$0xff]  ;;  %v151_v48 = vld [vmem:[#allocation5 + $0xf0] sm:$0xff] }
  0x31   :  { %542 = vmatprep.subr.bf16.mxu1 %v672_v0  ;;  %v534_v45 = vpack.c.bf16 %v57_v41, %v56_v40  ;;  %v555_v46 = vpack.c.bf16 %v150_v44, %v149_v43  ;;  %v41_v47 = vld [vmem:[#allocation2] sm:$0xff]  ;;  %v233_v51 = vld [vmem:[#allocation5 + $0x100] sm:$0xff]  ;;  %v234_v52 = vld [vmem:[#allocation5 + $0x108] sm:$0xff] }
  0x32   :  { %520 = vmatpush3.bf16.msra.mxu0 %v519_v14  ;;  %v152_v49 = vld [vmem:[#allocation5 + $0xf8] sm:$0xff]  ;;  %v235_v53 = vld [vmem:[#allocation5 + $0x110] sm:$0xff]  ;;  %v561_v54 = vpack.c.bf16 %v234_v52, %v233_v51  ;;  %v237_v57 = vld [vmem:[#allocation5 + $0x120] sm:$0xff] }
  0x33   :  { %521 = vmatprep.subr.bf16.mxu0 %v672_v0  ;;  %v558_v50 = vpack.c.bf16 %v152_v49, %v151_v48  ;;  %v236_v55 = vld [vmem:[#allocation5 + $0x118] sm:$0xff]  ;;  %v238_v58 = vld [vmem:[#allocation5 + $0x128] sm:$0xff]  ;;  %v239_v60 = vld [vmem:[#allocation5 + $0x130] sm:$0xff] }
  0x34   :  { %544 = vmatpush3.bf16.msra.mxu1 %v543_v24  ;;  %v564_v56 = vpack.c.bf16 %v236_v55, %v235_v53  ;;  %v567_v59 = vpack.c.bf16 %v238_v58, %v237_v57  ;;  %v240_v61 = vld [vmem:[#allocation5 + $0x138] sm:$0xff]  ;;  %v241_v63 = vld [vmem:[#allocation5 + $0x140] sm:$0xff]  ;;  %v243_v3 = vld [vmem:[#allocation5 + $0x150] sm:$0xff] }
  0x35   :  { %545 = vmatprep.subr.bf16.mxu1 %v672_v0  ;;  %v570_v62 = vpack.c.bf16 %v240_v61, %v239_v60  ;;  %v244_v4 = vld [vmem:[#allocation5 + $0x158] sm:$0xff]  ;;  %v245_v6 = vld [vmem:[#allocation5 + $0x160] sm:$0xff]  ;;  %v246_v7 = vld [vmem:[#allocation5 + $0x168] sm:$0xff] }
  0x36   :  { %523 = vmatpush3.bf16.msra.mxu0 %v522_v21  ;;  %v576_v5 = vpack.c.bf16 %v244_v4, %v243_v3  ;;  %v579_v8 = vpack.c.bf16 %v246_v7, %v245_v6  ;;  %v350_v9 = vld [vmem:[%s780_s2] ss:$0 sm:$0xff]  ;;  %v247_v14 = vld [vmem:[#allocation5 + $0x170] sm:$0xff]  ;;  %v352_v17 = vld [vmem:[%s780_s2 + $0x1] ss:$0 sm:$0xff] }
  0x37   :  { %524 = vmatprep.subr.bf16.mxu0 %v672_v0  ;;  %v248_v15 = vld [vmem:[#allocation5 + $0x178] sm:$0xff] }
  0x38   :  { %547 = vmatpush3.bf16.msra.mxu1 %v546_v30  ;;  %v582_v16 = vpack.c.bf16 %v248_v15, %v247_v14  ;;  %v354_v21 = vld [vmem:[%s780_s2 + $0x2] ss:$0 sm:$0xff] }
  0x39   :  { %548 = vmatprep.subr.bf16.mxu1 %v672_v0 }
  0x3a   :  { %526 = vmatpush3.bf16.msra.mxu0 %v525_v27 }
  0x3b   :  { %527 = vmatprep.subr.bf16.mxu0 %v672_v0 }
  0x3c   :  { %550 = vmatpush3.bf16.msra.mxu1 %v549_v36 }
  0x3d   :  { %551 = vmatprep.subr.bf16.mxu1 %v672_v0 }
  0x3e   :  { %529 = vmatpush3.bf16.msra.mxu0 %v528_v33 }
  0x3f   :  { %530 = vmatprep.subr.bf16.mxu0 %v672_v0 }
  0x40   :  { %553 = vmatpush3.bf16.msra.mxu1 %v552_v42 }
  0x41   :  { %554 = vmatprep.subr.bf16.mxu1 %v672_v0 }
  0x42   :  { %532 = vmatpush3.bf16.msra.mxu0 %v531_v39 }
  0x43   :  { %533 = vmatprep.subr.bf16.mxu0 %v672_v0 }
  0x44   :  { %556 = vmatpush3.bf16.msra.mxu1 %v555_v46 }
  0x45   :  { %557 = vmatprep.subr.bf16.mxu1 %v672_v0 }
  0x46   :  { %535 = vmatpush3.bf16.msra.mxu0 %v534_v45 }
  0x47   :  { %560 = vmatprep.subr.bf16.mxu0 %v672_v0 }
  0x48   :  { %559 = vmatpush3.bf16.msra.mxu1 %v558_v50 }
  0x49   :  { %440 = vmatmul.mubr.f32.vlgmr.msra.gmra.mrb[0].mxu0 %v41_v47 }
  0x4a   :  { %509 = vmatprep.mubr.msk.f32.mxu0 %vm673_vm0, %v674_v1  ;;  %562 = vmatpush3.bf16.msra.mxu0 %v561_v54  ;;  %v242_v1 = vld [vmem:[#allocation5 + $0x148] sm:$0xff] }
  0x4b   :  { %563 = vmatprep.subr.bf16.mxu0 %v672_v0  ;;  %v573_v2 = vpack.c.bf16 %v242_v1, %v241_v63 }
  0x4e   :  { %565 = vmatpush3.bf16.msra.mxu0 %v564_v56 }
  0x4f   :  { %566 = vmatprep.subr.bf16.mxu0 %v672_v0 }
  0x52   :  { %568 = vmatpush3.bf16.msra.mxu0 %v567_v59 }
  0x53   :  { %569 = vmatprep.subr.bf16.mxu0 %v672_v0 }
  0x56   :  { %571 = vmatpush3.bf16.msra.mxu0 %v570_v62 }
  0x57   :  { %572 = vmatprep.subr.bf16.mxu0 %v672_v0 }
  0x5a   :  { %574 = vmatpush3.bf16.msra.mxu0 %v573_v2 }
  0x5b   :  { %575 = vmatprep.subr.bf16.mxu0 %v672_v0 }
  0x5e   :  { %577 = vmatpush3.bf16.msra.mxu0 %v576_v5 }
  0x5f   :  { %578 = vmatprep.subr.bf16.mxu0 %v672_v0 }
  0x62   :  { %580 = vmatpush3.bf16.msra.mxu0 %v579_v8 }
  0x63   :  { %581 = vmatprep.subr.bf16.mxu0 %v672_v0 }
  0x66   :  { %583 = vmatpush3.bf16.msra.mxu0 %v582_v16 }
 0x11c   :  { %v131_v10 = vpop.f32.mrb[0].mxu0 }
 0x11d   :  { %v132_v11 = vadd.f32 %v350_v9, %v131_v10  ;;  %v441_v12 = vpop.f32.mrb[1].mxu0 }
 0x11f   :  { %v135_v13 = vmax.f32 %v132_v11, 0.0 }
 0x121   :  { %475 = vmatmul.mubr.f32.vlgmr.msra.gmra.mrb[0].mxu1 %v135_v13 }
 0x1f4   :  { %v227_v18 = vpop.f32.mrb[0].mxu1 }
 0x1f5   :  { %v228_v19 = vadd.f32 %v352_v17, %v227_v18  ;;  %v476_v0 = vpop.f32.mrb[1].mxu1 }
 0x1f7   :  { %v231_v20 = vmax.f32 %v228_v19, 0.0 }
 0x1f9   :  { %510 = vmatmul.mubr.f32.vlgmr.msra.gmra.mrb[2].mxu0 %v231_v20 }
 0x2cc   :  { %v323_v22 = vpop.f32.mrb[2].mxu0 }
 0x2cd   :  { %v324_v23 = vadd.f32 %v354_v21, %v323_v22  ;;  %v511_v24 = vpop.f32.mrb[3].mxu0 }
 0x2cf   :  { %v355_v25 = vmul.f32 -1.442695, %v324_v23 }
 0x2d1   :  { %592 = vpow2.f32 %v355_v25 }
 0x2db   :  { %v593_v26 = vpop.eup %592 }
 0x2dc   :  { %v330_v27 = vadd.f32 1.0, %v593_v26 }
 0x2de   :  { %594 = vrcp.f32 %v330_v27 }
 0x2e8   :  { %v595_v28 = vpop.eup %594 }
 0x2e9   :  { %333 = vst [vmem:[#allocation7] sm:$0xff] %v595_v28 }
 0x2ea   :  { %651 = shalt.err (!%p648_p6)
}
 0x2eb   :  { %s652_s19 = scalar_lea.hbm %s781_s3, 128 }
 0x2ec   :  { %p653_p7 = scmp.ne.s32.totalorder %s781_s3, %s652_s19  ;;  %p656_p8 = scmp.lt.u32.totalorder %s652_s19, %s781_s3 }
 0x2ee   :  { %p658_p9 = pnand %p656_p8, %p653_p7 }
 0x2f0   :  { %661 = shalt.err (!%p658_p9)
}
 0x2f1   :  { %343 = dma.vmem_to_hbm [thread:$0]  %s341_s16, 128, %s781_s3, [#allocation4]  }
 0x2f2   :  { %666 = dma.done.wait [#allocation4], 128  }
 0x2f3   :  { %667 = vsyncadd [#allocation4], 4294967168 }
 0x2f4   :  { %347 = vsyncpa [#allocation3], 1 }
 0x2f5   :  { %348 = vsyncpa [#allocation6], 1 }
 0x2f6   :  { %349 = vsyncpa [#allocation4], 1 }

</bundles_post_ra>
